<compile_context>
chip_gen: v7x
topology: tpu7x:2x2x1
jax: 0.10.0
libtpu: 0.0.40
codegen_flags: <defaults>
</compile_context>

<pallas_src>
import jax
import jax.numpy as jnp
from jax import lax
from jax.experimental import pallas as pl
from jax.experimental.pallas import tpu as pltpu

LANE = 128
MAX_BLOCK_ROWS = 8192                 # 8192 x 128 f32 = 4 MiB per input buffer
VMEM_LIMIT_BYTES = 32 * 1024 * 1024   # 2 inputs x 2 bufs x 4 MiB = 16 MiB + slack
MIN_PALLAS_ELEMS = 1 << 16            # below this, fused XLA reduce is faster


def _round_up(x, m):
    return (x + m - 1) // m * m


def _num_tensorcore_shards():
    """2 shards (core-parallel) on 2-TensorCore chips (v7x); 1 on v5e/v6e."""
    try:
        kind = jax.devices()[0].device_kind.lower()
    except Exception:
        return 1
    return 2 if "v7" in kind else 1


def _make_kernel(rows, block_rows, tiles_per_shard, needs_mask):
    """Build the MSE-sum kernel with static sizes closed over."""

    def kernel(p_ref, g_ref, out_ref):
        c = pl.program_id(0)           # shard (core-parallel on v7x)
        i = pl.program_id(1)           # row-tile within shard (reduction axis)

        @pl.when(i == 0)
        def _():
            out_ref[...] = jnp.zeros_like(out_ref)

        d = p_ref[...].astype(jnp.float32) - g_ref[...].astype(jnp.float32)
        sq = d * d

        def accumulate(x):
            # (block_rows, 128) -> (8, 128) vreg-tree reduce: pure VPU vadds
            # (no XLU), accumulated into the resident (8, 128) output block.
            out_ref[...] += x.reshape(-1, 8, LANE).sum(axis=0)

        if needs_mask:
            tile_idx = c * tiles_per_shard + i
            row0 = tile_idx * block_rows
            is_partial = row0 + block_rows > rows

            @pl.when(is_partial)
            def _():
                # Select (not multiply) so stale/NaN garbage in out-of-bounds
                # block rows cannot leak into the sum.
                row_ids = row0 + lax.broadcasted_iota(
                    jnp.int32, (block_rows, LANE), 0)
                accumulate(jnp.where(row_ids < rows, sq, 0.0))

            @pl.when(jnp.logical_not(is_partial))
            def _():
                accumulate(sq)
        else:
            accumulate(sq)

    return kernel


def intensity_loss(preds, gts, *, max_block_rows=MAX_BLOCK_ROWS,
                   min_pallas_elems=MIN_PALLAS_ELEMS):
    """Equivalent of torch.mean((preds - gts) ** 2). Returns a scalar f32."""
    assert preds.shape == gts.shape
    n = preds.size

    # Tiny inputs: pallas_call launch/pipeline overhead dominates; let XLA fuse.
    if n < min_pallas_elems:
        d = preds.astype(jnp.float32) - gts.astype(jnp.float32)
        return jnp.mean(d * d)

    p_flat = preds.reshape(-1)   # free for contiguous arrays
    g_flat = gts.reshape(-1)

    rem = n % LANE
    if rem:
        # Rare lane-ragged case: minimal pad to the next lane multiple. Pads
        # are identical zeros on both operands, so their diff contributes 0.
        pad = LANE - rem
        p_flat = jnp.pad(p_flat, (0, pad))
        g_flat = jnp.pad(g_flat, (0, pad))

    rows = p_flat.size // LANE
    p2d = p_flat.reshape(rows, LANE)
    g2d = g_flat.reshape(rows, LANE)

    # Row tile: 8-aligned so the in-kernel vreg-tree reshape is exact; partial
    # coverage is handled by the in-kernel row mask (no full-array padding).
    max_block_rows = max(8, _round_up(min(max_block_rows, MAX_BLOCK_ROWS), 8))
    block_rows = min(max_block_rows, _round_up(rows, 8))

    total_tiles = pl.cdiv(rows, block_rows)
    num_shards = min(_num_tensorcore_shards(), total_tiles)
    tiles_per_shard = pl.cdiv(total_tiles, num_shards)
    needs_mask = (num_shards * tiles_per_shard * block_rows) != rows
    overshoot = num_shards * tiles_per_shard > total_tiles

    def in_map(c, i):
        t = c * tiles_per_shard + i
        if overshoot:
            # Overshoot tiles re-fetch the last valid block; their contribution
            # is zeroed by the in-kernel row mask.
            t = jnp.minimum(t, total_tiles - 1)
        return (t, 0)

    kernel = _make_kernel(rows, block_rows, tiles_per_shard, needs_mask)

    if num_shards > 1:
        # Genuinely split the shard axis across TensorCores (v7x).
        dim_sem = (pltpu.CORE_PARALLEL, pltpu.ARBITRARY)
    else:
        dim_sem = (pltpu.ARBITRARY, pltpu.ARBITRARY)

    bytes_in = 2 * n * preds.dtype.itemsize
    out = pl.pallas_call(
        kernel,
        out_shape=jax.ShapeDtypeStruct((num_shards * 8, LANE), jnp.float32),
        grid_spec=pltpu.PrefetchScalarGridSpec(
            num_scalar_prefetch=0,
            grid=(num_shards, tiles_per_shard),
            in_specs=[
                pl.BlockSpec((block_rows, LANE), in_map),
                pl.BlockSpec((block_rows, LANE), in_map),
            ],
            out_specs=pl.BlockSpec((8, LANE), lambda c, i: (c, 0)),
        ),
        compiler_params=pltpu.CompilerParams(
            dimension_semantics=dim_sem,
            vmem_limit_bytes=VMEM_LIMIT_BYTES,
        ),
        cost_estimate=pl.CostEstimate(
            flops=3 * n,
            transcendentals=0,
            bytes_accessed=bytes_in + num_shards * 8 * LANE * 4,
        ),
    )(p2d, g2d)

    # Each shard leaves its partial (8, 128) sums in its own output block; the
    # final cross-lane reduce + divide is a trivial XLA op on 1-2 KiB of data.
    return jnp.sum(out) / jnp.float32(n)


if __name__ == "__main__":
    key = jax.random.PRNGKey(0)
    k1, k2, k3, k4, k5, k6 = jax.random.split(key, 6)

    # Primary test: NCHW input like the PyTorch module (small shapes;
    # exercises the small-input bypass).
    preds = jax.random.normal(k1, (2, 4, 16, 16), dtype=jnp.float32)
    gts = jax.random.normal(k2, (2, 4, 16, 16), dtype=jnp.float32)
    loss = intensity_loss(preds, gts)
    jax.block_until_ready(loss)
    ref = jnp.mean((preds - gts) ** 2)
    assert jnp.allclose(loss, ref, rtol=1e-5, atol=1e-6), (loss, ref)

    # Force the Pallas kernel on the same small input (single-tile path).
    loss_k = intensity_loss(preds, gts, min_pallas_elems=0)
    jax.block_until_ready(loss_k)
    assert jnp.allclose(loss_k, ref, rtol=1e-5, atol=1e-6), (loss_k, ref)

    # Multi-tile + tail-mask (+ 2-shard on v7x) path.
    p2 = jax.random.normal(k3, (2, 4, 200, 192), dtype=jnp.float32)
    g2 = jax.random.normal(k4, (2, 4, 200, 192), dtype=jnp.float32)
    r2 = jnp.mean((p2 - g2) ** 2)
    l2 = intensity_loss(p2, g2, max_block_rows=256)   # force several tiles
    jax.block_until_ready(l2)
    assert jnp.allclose(l2, r2, rtol=1e-4, atol=1e-6), (l2, r2)
    l2b = intensity_loss(p2, g2)                       # default big-tile path
    jax.block_until_ready(l2b)
    assert jnp.allclose(l2b, r2, rtol=1e-4, atol=1e-6), (l2b, r2)

    # Lane-ragged element count + rows not a multiple of 8 (partial block).
    p3 = jax.random.normal(k5, (3, 5, 17, 19), dtype=jnp.float32)
    g3 = jax.random.normal(k6, (3, 5, 17, 19), dtype=jnp.float32)
    l3 = intensity_loss(p3, g3, min_pallas_elems=0)
    jax.block_until_ready(l3)
    r3 = jnp.mean((p3 - g3) ** 2)
    assert jnp.allclose(l3, r3, rtol=1e-5, atol=1e-6), (l3, r3)

    print("KERNEL_OK")
</pallas_src>

<mosaic_0001>
module attributes {stable_mosaic.version = 11 : i64} {
  func.func @kernel(%arg0: i32, %arg1: i32, %arg2: memref<16x128xf32, #tpu.memory_space<vmem>>, %arg3: memref<16x128xf32, #tpu.memory_space<vmem>>, %arg4: memref<8x128xf32, #tpu.memory_space<vmem>>) attributes {dimension_semantics = [#tpu.dimension_semantics<arbitrary>, #tpu.dimension_semantics<arbitrary>], iteration_bounds = array<i64: 1, 1>, scalar_prefetch = 0 : i64, scratch_operands = 0 : i64, tpu.core_type = #tpu.core_type<tc>, window_params = [{transform_indices = @transform_0, window_bounds = array<i64: 16, 128>}, {transform_indices = @transform_1, window_bounds = array<i64: 16, 128>}, {transform_indices = @transform_2, window_bounds = array<i64: 8, 128>}]} {
    %c0_i32 = arith.constant 0 : i32
    %0 = arith.cmpi eq, %arg1, %c0_i32 : i32
    %1 = arith.extui %0 : i1 to i32
    %c0_i32_0 = arith.constant 0 : i32
    %2 = arith.cmpi ne, %1, %c0_i32_0 : i32
    scf.if %2 {
      %cst_8 = arith.constant 0.000000e+00 : f32
      %12 = vector.broadcast %cst_8 : f32 to vector<8x128xf32>
      %c0_9 = arith.constant 0 : index
      %c0_10 = arith.constant 0 : index
      %13 = vector.load %arg4[%c0_9, %c0_10] : memref<8x128xf32, #tpu.memory_space<vmem>>, vector<8x128xf32>
      tpu.vector_store %arg4[%c0_9, %c0_10], %12 {strides = array<i32>} : memref<8x128xf32, #tpu.memory_space<vmem>>, vector<8x128xf32>,
    } else {
    }
    %c0 = arith.constant 0 : index
    %c0_1 = arith.constant 0 : index
    %3 = vector.load %arg2[%c0, %c0_1] : memref<16x128xf32, #tpu.memory_space<vmem>>, vector<16x128xf32>
    %c0_2 = arith.constant 0 : index
    %c0_3 = arith.constant 0 : index
    %4 = vector.load %arg3[%c0_2, %c0_3] : memref<16x128xf32, #tpu.memory_space<vmem>>, vector<16x128xf32>
    %5 = arith.subf %3, %4 : vector<16x128xf32>
    %6 = arith.mulf %5, %5 : vector<16x128xf32>
    %c0_4 = arith.constant 0 : index
    %c0_5 = arith.constant 0 : index
    %7 = vector.load %arg4[%c0_4, %c0_5] : memref<8x128xf32, #tpu.memory_space<vmem>>, vector<8x128xf32>
    %8 = vector.shape_cast %6 : vector<16x128xf32> to vector<2x8x128xf32>
    %cst = arith.constant dense<0.000000e+00> : vector<8x128xf32>
    %9 = vector.multi_reduction <add>, %8, %cst [0] : vector<2x8x128xf32> to vector<8x128xf32>
    %10 = arith.addf %7, %9 : vector<8x128xf32>
    %c0_6 = arith.constant 0 : index
    %c0_7 = arith.constant 0 : index
    %11 = vector.load %arg4[%c0_6, %c0_7] : memref<8x128xf32, #tpu.memory_space<vmem>>, vector<8x128xf32>
    tpu.vector_store %arg4[%c0_6, %c0_7], %10 {strides = array<i32>} : memref<8x128xf32, #tpu.memory_space<vmem>>, vector<8x128xf32>,
    return
  }
  func.func @transform_0(%arg0: i32, %arg1: i32) -> (i32, i32) {
    %c1_i32 = arith.constant 1 : i32
    %0 = arith.muli %arg0, %c1_i32 : i32
    %1 = arith.addi %0, %arg1 : i32
    %c0_i32 = arith.constant 0 : i32
    %c0_i32_0 = arith.constant 0 : i32
    return %1, %c0_i32 : i32, i32
  }
  func.func @transform_1(%arg0: i32, %arg1: i32) -> (i32, i32) {
    %c1_i32 = arith.constant 1 : i32
    %0 = arith.muli %arg0, %c1_i32 : i32
    %1 = arith.addi %0, %arg1 : i32
    %c0_i32 = arith.constant 0 : i32
    %c0_i32_0 = arith.constant 0 : i32
    return %1, %c0_i32 : i32, i32
  }
  func.func @transform_2(%arg0: i32, %arg1: i32) -> (i32, i32) {
    %c0_i32 = arith.constant 0 : i32
    %c0_i32_0 = arith.constant 0 : i32
    return %arg0, %c0_i32 : i32, i32
  }
}

</mosaic_0001>

<bundles_post_ra>
// kernel: tpu_custom_call.1
= control target key start
LH: loop header
LB: loop body
LE: loop exit
PB: predicated region body
PF: predicated region fallthrough
CT: control target
= control target key end

     0   :  { %7 = vsyncpa [#allocation3], 0  ;;  %s219_s0 = inlined_call_operand.hbm [shape: f32[16,128], index: 0, kind: input, shape index: {}]   ;;  %s220_s1 = inlined_call_operand.hbm [shape: f32[16,128], index: 1, kind: input, shape index: {}]   ;;  %s221_s2 = inlined_call_operand.hbm [shape: f32[8,128], index: 2, kind: output, shape index: {}]  }
   0x1   :  { %8 = vsyncpa [#allocation6], 0 }
   0x2   :  { %9 = vsyncpa [#allocation4], 0  ;;  %s163_s9 = smov [#allocation2]   ;;  %s91_s13 = scalar_lea.hbm %s219_s0, 256 }
   0x3   :  { %s19_s10 = sshll.u32 %s163_s9, 4  ;;  %p92_p0 = scmp.ne.s32.totalorder %s219_s0, %s91_s13  ;;  %s20_s10 = int_to_ptr.vmem [resolvable:$true] %s19_s10 }
   0x4   :  { %p95_p1 = scmp.lt.u32.totalorder %s91_s13, %s219_s0 }
   0x6   :  { %p97_p2 = pnand %p95_p1, %p92_p0 }
   0x8   :  { %100 = shalt.err (!%p97_p2)
}
   0x9   :  { %s101_s18 = scalar_lea.vmem %s20_s10, 256  ;;  %p106_p4 = scmp.lt.s32.totalorder %s20_s10, %s20_s10 }
   0xa   :  { %p102_p3 = scmp.ne.s32.totalorder %s20_s10, %s101_s18  ;;  %p107_p5 = scmp.lt.s32.totalorder %s101_s18, %s101_s18 }
   0xc   :  { %p108_p6 = por %p107_p5, %p106_p4 }
   0xe   :  { %p109_p7 = pnand %p108_p6, %p102_p3 }
  0x10   :  { %112 = shalt.err (!%p109_p7)
}
  0x11   :  { %s164_s19 = smov 128   ;;  %s165_s20 = smov 8  }
  0x12   :  { %25 = dma.hbm_to_vmem [thread:$0]  %s219_s0, 256, %s20_s10, [#allocation3], %s164_s19, %s164_s19, %s165_s20  }
  0x13   :  { %s166_s23 = smov [#allocation5]   ;;  %s113_s27 = scalar_lea.hbm %s220_s1, 256 }
  0x14   :  { %s35_s24 = sshll.u32 %s166_s23, 4  ;;  %p114_p8 = scmp.ne.s32.totalorder %s220_s1, %s113_s27  ;;  %s36_s24 = int_to_ptr.vmem [resolvable:$true] %s35_s24 }
  0x15   :  { %p117_p9 = scmp.lt.u32.totalorder %s113_s27, %s220_s1 }
  0x17   :  { %p119_p10 = pnand %p117_p9, %p114_p8 }
  0x19   :  { %122 = shalt.err (!%p119_p10)
}
  0x1a   :  { %s123_s4 = scalar_lea.vmem %s36_s24, 256  ;;  %p128_p12 = scmp.lt.s32.totalorder %s36_s24, %s36_s24 }
  0x1b   :  { %p124_p11 = scmp.ne.s32.totalorder %s36_s24, %s123_s4  ;;  %p129_p13 = scmp.lt.s32.totalorder %s123_s4, %s123_s4 }
  0x1d   :  { %p130_p0 = por %p129_p13, %p128_p12 }
  0x1f   :  { %p131_p1 = pnand %p130_p0, %p124_p11 }
  0x21   :  { %134 = shalt.err (!%p131_p1)
}
  0x22   :  { %41 = dma.hbm_to_vmem [thread:$0]  %s220_s1, 256, %s36_s24, [#allocation6], %s164_s19, %s164_s19, %s165_s20  }
  0x23   :  { %157 = dma.done.wait [#allocation3], 256  }
  0x24   :  { %158 = vsyncadd [#allocation3], 4294967040 }
  0x25   :  { %159 = dma.done.wait [#allocation6], 256  }
  0x26   :  { %160 = vsyncadd [#allocation6], 4294967040  ;;  %v57_v0 = vld [vmem:[#allocation2] sm:$0xff]  ;;  %v58_v1 = vld [vmem:[#allocation2 + $0x8] sm:$0xff]  ;;  %s167_s6 = smov [#allocation7]  }
  0x27   :  { %v59_v2 = vld [vmem:[#allocation5] sm:$0xff]  ;;  %v60_v3 = vld [vmem:[#allocation5 + $0x8] sm:$0xff]  ;;  %s75_s7 = sshll.u32 %s167_s6, 4  ;;  %s76_s7 = int_to_ptr.vmem [resolvable:$true] %s75_s7 }
  0x28   :  { %v61_v4 = vsub.f32 %v57_v0, %v59_v2  ;;  %v62_v5 = vsub.f32 %v58_v1, %v60_v3  ;;  %s135_s8 = scalar_lea.vmem %s76_s7, 128  ;;  %p140_p3 = scmp.lt.s32.totalorder %s76_s7, %s76_s7 }
  0x29   :  { %p136_p2 = scmp.ne.s32.totalorder %s76_s7, %s135_s8  ;;  %p141_p4 = scmp.lt.s32.totalorder %s135_s8, %s135_s8 }
  0x2a   :  { %v63_v6 = vmul.f32 %v61_v4, %v61_v4  ;;  %v64_v7 = vmul.f32 %v62_v5, %v62_v5 }
  0x2b   :  { %p142_p5 = por %p141_p4, %p140_p3 }
  0x2c   :  { %v66_v8 = vadd.f32 %v64_v7, %v63_v6 }
  0x2d   :  { %p143_p6 = pnand %p142_p5, %p136_p2 }
  0x2e   :  { %68 = vst [vmem:[#allocation7] sm:$0xff] %v66_v8 }
  0x2f   :  { %146 = shalt.err (!%p143_p6)
}
  0x30   :  { %s147_s10 = scalar_lea.hbm %s221_s2, 128 }
  0x31   :  { %p148_p7 = scmp.ne.s32.totalorder %s221_s2, %s147_s10  ;;  %p151_p8 = scmp.lt.u32.totalorder %s147_s10, %s221_s2 }
  0x33   :  { %p153_p9 = pnand %p151_p8, %p148_p7 }
  0x35   :  { %156 = shalt.err (!%p153_p9)
}
  0x36   :  { %78 = dma.vmem_to_hbm [thread:$0]  %s76_s7, 128, %s221_s2, [#allocation4]  }
  0x37   :  { %161 = dma.done.wait [#allocation4], 128  }
  0x38   :  { %162 = vsyncadd [#allocation4], 4294967168 }
  0x39   :  { %82 = vsyncpa [#allocation3], 1 }
  0x3a   :  { %83 = vsyncpa [#allocation6], 1 }
  0x3b   :  { %84 = vsyncpa [#allocation4], 1 }

</bundles_post_ra>
